<compile_context>
chip_gen: v7x
topology: tpu7x:2x2x1
jax: 0.10.0
libtpu: 0.0.40
codegen_flags: <defaults>
</compile_context>

<pallas_src>
import functools

import jax
import jax.numpy as jnp
from jax.experimental import pallas as pl
from jax.experimental.pallas import tpu as pltpu

_INV_SQRT2 = 0.7071067811865476
_SQRT_2_OVER_PI = 0.7978845608028654


# --------------------------------------------------------------------------------------
# small helpers
# --------------------------------------------------------------------------------------
def _round_up(x, m):
    return (x + m - 1) // m * m


def _cdiv(a, b):
    return (a + b - 1) // b


def _device_kind():
    try:
        return jax.devices()[0].device_kind.lower()
    except Exception:
        return ""


def _vmem_capacity_bytes():
    try:
        return int(pltpu.get_tpu_info().vmem_capacity_bytes)
    except Exception:
        pass
    kind = _device_kind()
    if "v7" in kind:
        return 64 * 1024 * 1024
    if "v5" in kind or "v6" in kind:
        return 128 * 1024 * 1024
    return 64 * 1024 * 1024  # conservative default for unknown parts


def _default_tm_pref():
    # v5e: 4x(128x128) MXU, single vector-store slot -> 128-row passes lose nothing
    # and halve live epilogue temporaries / spill traffic.
    kind = _device_kind()
    if "v5 lite" in kind or "v5e" in kind or "v5litepod" in kind:
        return 128
    return 256


def _choose_tk(d_in, tk_max):
    """Pick the K (d_in) tile. Returns (tk, d_in_padded).

    tk == d_in when it fits, else a 128-multiple divisor of d_in, else tk_max with
    zero-padding of d_in (rare fallback; zero rows/cols contribute 0 to the matmul).
    """
    if d_in <= tk_max:
        return d_in, d_in
    c = (tk_max // 128) * 128
    while c >= 128:
        if d_in % c == 0:
            return c, d_in
        c -= 128
    tk = (tk_max // 128) * 128
    return tk, _round_up(d_in, tk)


_TM_CANDS = (512, 256, 128, 64, 32, 16, 8)
_TN_CANDS = (4096, 2048, 1024, 512, 256, 128)


def _select_tiles(M, d_out, tk, x_bytes, w_bytes, o_bytes, budget, tm_pref, tn_max):
    """Pick (tm, tn): tallest row tile first (fewer weight re-reads), then the widest
    feature tile that still fits the per-generation VMEM budget."""
    m_cap = _round_up(max(M, 1), 8)
    tm_cands = []
    for c in (tm_pref,) + _TM_CANDS:
        c = min(c, m_cap, tm_pref)
        if c not in tm_cands:
            tm_cands.append(c)
    tn_cands = []
    for c in (min(d_out, tn_max),) + tuple(min(c, tn_max) for c in _TN_CANDS if c < d_out):
        if c not in tn_cands:
            tn_cands.append(c)

    def vmem_usage(tm, tn):
        return (2 * tm * tk * x_bytes        # x tile (double-buffered)
                + 4 * tk * tn * w_bytes      # Wh + Wg tiles (double-buffered)
                + 4 * tn * 4                 # bias tile
                + 2 * tm * tn * o_bytes      # output tile
                + 2 * tm * tn * 4            # f32 accumulators (scratch)
                + 3 * tm * tn * 4)           # epilogue temporaries headroom

    for tm in tm_cands:
        for tn in tn_cands:
            if vmem_usage(tm, tn) <= budget:
                return tm, tn
    return tm_cands[-1], tn_cands[-1]


# --------------------------------------------------------------------------------------
# kernel
# --------------------------------------------------------------------------------------
def _geglu_kernel(x_ref, wh_ref, wg_ref, b_ref, o_ref, acc_h, acc_g, *, approximate_gelu):
    """One (tm x tn) output tile, accumulated over the K (d_in) grid axis (axis 2)."""
    k = pl.program_id(2)

    @pl.when(k == 0)
    def _():
        acc_h[...] = jnp.zeros_like(acc_h)
        acc_g[...] = jnp.zeros_like(acc_g)

    x = x_ref[...]                                                          # (tm, tk)
    acc_h[...] += jnp.dot(x, wh_ref[...], preferred_element_type=jnp.float32)
    acc_g[...] += jnp.dot(x, wg_ref[...], preferred_element_type=jnp.float32)

    @pl.when(k == pl.num_programs(2) - 1)
    def _():
        b = b_ref[...].astype(jnp.float32)                                  # (2, tn)
        h = acc_h[...] + b[0:1, :]
        g = acc_g[...] + b[1:2, :]
        if approximate_gelu:
            # tanh form routes the transcendental to the EUP slot (hidden under MXU).
            gelu_g = 0.5 * g * (1.0 + jnp.tanh(_SQRT_2_OVER_PI * (g + 0.044715 * g * g * g)))
        else:
            # exact erf GELU == torch.nn.GELU() default; multiply instead of divide.
            gelu_g = 0.5 * g * (1.0 + jax.lax.erf(g * _INV_SQRT2))
        o_ref[...] = (h * gelu_g).astype(o_ref.dtype)


# --------------------------------------------------------------------------------------
# wrappers
# --------------------------------------------------------------------------------------
def pack_geglu_params(w, b, param_dtype=None):
    """One-time repack of torch nn.Linear params (call once at init; reuse).

    w: (2*d_out, d_in) torch layout; b: (2*d_out,).
    Returns w_h (d_in, d_out), w_g (d_in, d_out), b2 (2, d_out) f32.
    param_dtype: optionally store weights at lower precision (e.g. jnp.bfloat16);
                 activations are streamed at the same precision, accumulation stays f32.
    """
    d_out = w.shape[0] // 2
    wt = w.T                                  # (d_in, 2*d_out)
    w_h, w_g = wt[:, :d_out], wt[:, d_out:]
    if param_dtype is not None:
        w_h = w_h.astype(param_dtype)
        w_g = w_g.astype(param_dtype)
    b2 = jnp.stack([b[:d_out], b[d_out:]], axis=0).astype(jnp.float32)
    return w_h, w_g, b2


@functools.partial(jax.jit, static_argnames=("approximate_gelu", "tm_pref", "tn_max", "tk_max"))
def geglu_packed(x, w_h, w_g, b2, *, approximate_gelu=False,
                 tm_pref=None, tn_max=4096, tk_max=2048):
    """GeGLU forward on pre-packed params. x: (..., d_in) -> (..., d_out)."""
    d_in, d_out = w_h.shape
    assert x.shape[-1] == d_in
    lead_shape = x.shape[:-1]
    out_dtype = x.dtype
    x2d = x.reshape(-1, d_in)
    M = x2d.shape[0]

    # Low-precision weights also stream low-precision activations (f32 accumulation kept).
    if jnp.dtype(w_h.dtype).itemsize < jnp.dtype(x2d.dtype).itemsize:
        x2d = x2d.astype(w_h.dtype)

    if tm_pref is None:
        tm_pref = _default_tm_pref()

    # ---- K (d_in) tiling: VMEM no longer scales with d_in ----
    tk, d_in_p = _choose_tk(d_in, tk_max)
    if d_in_p != d_in:
        pad = d_in_p - d_in
        x2d = jnp.pad(x2d, ((0, 0), (0, pad)))
        w_h = jnp.pad(w_h, ((0, pad), (0, 0)))
        w_g = jnp.pad(w_g, ((0, pad), (0, 0)))

    # ---- per-generation VMEM budgeting ----
    capacity = _vmem_capacity_bytes()
    budget = int(capacity * 0.70)        # tile working set
    vmem_limit = int(capacity * 0.80)    # scoped limit, leave runtime/epilogue headroom

    x_bytes = jnp.dtype(x2d.dtype).itemsize
    w_bytes = jnp.dtype(w_h.dtype).itemsize
    o_bytes = jnp.dtype(out_dtype).itemsize
    tm, tn = _select_tiles(M, d_out, tk, x_bytes, w_bytes, o_bytes, budget, tm_pref, tn_max)

    num_i = _cdiv(M, tm)        # row tiles (ragged edge -> masked block, no padding copy)
    num_j = _cdiv(d_out, tn)    # feature tiles (ragged edge -> masked block)
    num_k = d_in_p // tk        # reduction tiles

    # ---- grid order: re-stream the cheaper operand from HBM; keep the larger-extent
    #      parallel axis leading so megacore (v7x) splits the dominant stream. ----
    x_traffic = M * d_in_p * x_bytes
    w_traffic = 2 * d_out * d_in_p * w_bytes
    if num_k == 1:
        j_outer = w_traffic * (num_i - 1) > x_traffic * (num_j - 1)
    else:
        j_outer = num_j > 1  # traffic is order-independent; shard weight tiles across TCs
    if j_outer and num_j == 1 and num_i > 1:
        j_outer = False
    if (not j_outer) and num_i == 1 and num_j > 1:
        j_outer = True

    if j_outer:
        grid = (num_j, num_i, num_k)
        x_map = lambda j, i, k: (i, k)
        w_map = lambda j, i, k: (k, j)
        b_map = lambda j, i, k: (0, j)
        o_map = lambda j, i, k: (i, j)
    else:
        grid = (num_i, num_j, num_k)
        x_map = lambda i, j, k: (i, k)
        w_map = lambda i, j, k: (k, j)
        b_map = lambda i, j, k: (0, j)
        o_map = lambda i, j, k: (i, j)

    kernel = functools.partial(_geglu_kernel, approximate_gelu=approximate_gelu)

    out2d = pl.pallas_call(
        kernel,
        out_shape=jax.ShapeDtypeStruct((M, d_out), out_dtype),
        grid_spec=pltpu.PrefetchScalarGridSpec(
            num_scalar_prefetch=0,
            grid=grid,
            in_specs=[
                pl.BlockSpec((tm, tk), x_map),    # activations
                pl.BlockSpec((tk, tn), w_map),    # W_h tile
                pl.BlockSpec((tk, tn), w_map),    # W_g tile
                pl.BlockSpec((2, tn), b_map),     # [b_h; b_g] tile
            ],
            out_specs=pl.BlockSpec((tm, tn), o_map),
            scratch_shapes=[pltpu.VMEM((tm, tn), jnp.float32),   # acc_h
                            pltpu.VMEM((tm, tn), jnp.float32)],  # acc_g
        ),
        compiler_params=pltpu.CompilerParams(
            dimension_semantics=("parallel", "parallel", "arbitrary"),
            vmem_limit_bytes=vmem_limit,
        ),
    )(x2d, w_h, w_g, b2)

    return out2d.reshape(*lead_shape, d_out)


def geglu(x, w, b, *, param_dtype=None, approximate_gelu=False, **kwargs):
    """Convenience one-shot wrapper (re-packs per call; prefer pack_geglu_params + geglu_packed)."""
    w_h, w_g, b2 = pack_geglu_params(w, b, param_dtype=param_dtype)
    return geglu_packed(x, w_h, w_g, b2, approximate_gelu=approximate_gelu, **kwargs)


def geglu_ref(x, w, b):
    """Pure-JAX reference matching the PyTorch module."""
    proj = x @ w.T + b
    d_out = w.shape[0] // 2
    h, g = proj[..., :d_out], proj[..., d_out:]
    return h * jax.nn.gelu(g, approximate=False)


# --------------------------------------------------------------------------------------
# self-test
# --------------------------------------------------------------------------------------
if __name__ == "__main__":
    key = jax.random.PRNGKey(0)

    def make_case(k, lead, d_in, d_out):
        kx, kw, kb = jax.random.split(k, 3)
        bound = 1.0 / (d_in ** 0.5)
        w = jax.random.uniform(kw, (2 * d_out, d_in), jnp.float32, -bound, bound)
        b = jax.random.uniform(kb, (2 * d_out,), jnp.float32, -bound, bound)
        x = jax.random.normal(kx, (*lead, d_in), jnp.float32)
        return x, w, b

    k0, k1, k2 = jax.random.split(key, 3)

    # Case 1 (module spec scale): batch=2, seq=8, d_in=32, d_out=32. Params packed once.
    x, w, b = make_case(k0, (2, 8), 32, 32)
    w_h, w_g, b2 = pack_geglu_params(w, b)
    out = geglu_packed(x, w_h, w_g, b2)
    jax.block_until_ready(out)
    ref = geglu_ref(x, w, b)
    assert out.shape == ref.shape == (2, 8, 32)
    assert jnp.allclose(out, ref, atol=1e-5, rtol=1e-5), float(jnp.abs(out - ref).max())
    out_again = geglu_packed(x, w_h, w_g, b2)   # packed params reused across calls
    jax.block_until_ready(out_again)

    # Case 2: ragged row count (M=15), non-128-aligned d_out, multiple feature tiles
    # (tn forced to 128 -> 5 column tiles with a masked edge block).
    x2, w2, b2_ = make_case(k1, (3, 5), 64, 576)
    out2 = geglu(x2, w2, b2_, tn_max=128)
    jax.block_until_ready(out2)
    ref2 = geglu_ref(x2, w2, b2_)
    assert out2.shape == ref2.shape == (3, 5, 576)
    assert jnp.allclose(out2, ref2, atol=1e-4, rtol=1e-4), float(jnp.abs(out2 - ref2).max())

    # Case 3: exercises the K-reduction accumulator (tk_max=128 on d_in=320 -> 3 k-steps
    # with a zero-padded K tail) plus a masked feature-edge block.
    x3, w3, b3 = make_case(k2, (2, 8), 320, 192)
    out3 = geglu(x3, w3, b3, tn_max=128, tk_max=128)
    jax.block_until_ready(out3)
    ref3 = geglu_ref(x3, w3, b3)
    assert out3.shape == ref3.shape == (2, 8, 192)
    assert jnp.allclose(out3, ref3, atol=1e-4, rtol=1e-4), float(jnp.abs(out3 - ref3).max())

    print("KERNEL_OK")
</pallas_src>

<mosaic_0001>
module attributes {stable_mosaic.version = 11 : i64} {
  func.func @_geglu_kernel(%arg0: i32, %arg1: i32, %arg2: i32, %arg3: memref<16x32xf32, #tpu.memory_space<vmem>>, %arg4: memref<32x32xf32, #tpu.memory_space<vmem>>, %arg5: memref<32x32xf32, #tpu.memory_space<vmem>>, %arg6: memref<2x32xf32, #tpu.memory_space<vmem>>, %arg7: memref<16x32xf32, #tpu.memory_space<vmem>>, %arg8: memref<16x32xf32, #tpu.memory_space<vmem>>, %arg9: memref<16x32xf32, #tpu.memory_space<vmem>>) attributes {dimension_semantics = [#tpu.dimension_semantics<parallel>, #tpu.dimension_semantics<parallel>, #tpu.dimension_semantics<arbitrary>], iteration_bounds = array<i64: 1, 1, 1>, scalar_prefetch = 0 : i64, scratch_operands = 2 : i64, tpu.core_type = #tpu.core_type<tc>, window_params = [{transform_indices = @transform_0, window_bounds = array<i64: 16, 32>}, {transform_indices = @transform_1, window_bounds = array<i64: 32, 32>}, {transform_indices = @transform_2, window_bounds = array<i64: 32, 32>}, {transform_indices = @transform_3, window_bounds = array<i64: 2, 32>}, {transform_indices = @transform_4, window_bounds = array<i64: 16, 32>}]} {
    %c0_i32 = arith.constant 0 : i32
    %0 = arith.cmpi eq, %arg2, %c0_i32 : i32
    %1 = arith.extui %0 : i1 to i32
    %c0_i32_0 = arith.constant 0 : i32
    %2 = arith.cmpi ne, %1, %c0_i32_0 : i32
    scf.if %2 {
      %cst_17 = arith.constant 0.000000e+00 : f32
      %17 = vector.broadcast %cst_17 : f32 to vector<16x32xf32>
      %c0_18 = arith.constant 0 : index
      %c0_19 = arith.constant 0 : index
      %18 = vector.load %arg8[%c0_18, %c0_19] : memref<16x32xf32, #tpu.memory_space<vmem>>, vector<16x32xf32>
      tpu.vector_store %arg8[%c0_18, %c0_19], %17 {strides = array<i32>} : memref<16x32xf32, #tpu.memory_space<vmem>>, vector<16x32xf32>,
      %cst_20 = arith.constant 0.000000e+00 : f32
      %19 = vector.broadcast %cst_20 : f32 to vector<16x32xf32>
      %c0_21 = arith.constant 0 : index
      %c0_22 = arith.constant 0 : index
      %20 = vector.load %arg9[%c0_21, %c0_22] : memref<16x32xf32, #tpu.memory_space<vmem>>, vector<16x32xf32>
      tpu.vector_store %arg9[%c0_21, %c0_22], %19 {strides = array<i32>} : memref<16x32xf32, #tpu.memory_space<vmem>>, vector<16x32xf32>,
    } else {
    }
    %c0 = arith.constant 0 : index
    %c0_1 = arith.constant 0 : index
    %3 = vector.load %arg3[%c0, %c0_1] : memref<16x32xf32, #tpu.memory_space<vmem>>, vector<16x32xf32>
    %c0_2 = arith.constant 0 : index
    %c0_3 = arith.constant 0 : index
    %4 = vector.load %arg8[%c0_2, %c0_3] : memref<16x32xf32, #tpu.memory_space<vmem>>, vector<16x32xf32>
    %c0_4 = arith.constant 0 : index
    %c0_5 = arith.constant 0 : index
    %5 = vector.load %arg4[%c0_4, %c0_5] : memref<32x32xf32, #tpu.memory_space<vmem>>, vector<32x32xf32>
    %cst = arith.constant dense<0.000000e+00> : vector<16x32xf32>
    %6 = tpu.matmul %3, %5, %cst {dimension_numbers = #tpu.dot_dimension_numbers<[1], [0], [0], [1], [0, 0, 1, 1], [], []>} : vector<16x32xf32>, vector<32x32xf32>, vector<16x32xf32> -> vector<16x32xf32>
    %7 = arith.addf %4, %6 : vector<16x32xf32>
    %c0_6 = arith.constant 0 : index
    %c0_7 = arith.constant 0 : index
    %8 = vector.load %arg8[%c0_6, %c0_7] : memref<16x32xf32, #tpu.memory_space<vmem>>, vector<16x32xf32>
    tpu.vector_store %arg8[%c0_6, %c0_7], %7 {strides = array<i32>} : memref<16x32xf32, #tpu.memory_space<vmem>>, vector<16x32xf32>,
    %c0_8 = arith.constant 0 : index
    %c0_9 = arith.constant 0 : index
    %9 = vector.load %arg9[%c0_8, %c0_9] : memref<16x32xf32, #tpu.memory_space<vmem>>, vector<16x32xf32>
    %c0_10 = arith.constant 0 : index
    %c0_11 = arith.constant 0 : index
    %10 = vector.load %arg5[%c0_10, %c0_11] : memref<32x32xf32, #tpu.memory_space<vmem>>, vector<32x32xf32>
    %cst_12 = arith.constant dense<0.000000e+00> : vector<16x32xf32>
    %11 = tpu.matmul %3, %10, %cst_12 {dimension_numbers = #tpu.dot_dimension_numbers<[1], [0], [0], [1], [0, 0, 1, 1], [], []>} : vector<16x32xf32>, vector<32x32xf32>, vector<16x32xf32> -> vector<16x32xf32>
    %12 = arith.addf %9, %11 : vector<16x32xf32>
    %c0_13 = arith.constant 0 : index
    %c0_14 = arith.constant 0 : index
    %13 = vector.load %arg9[%c0_13, %c0_14] : memref<16x32xf32, #tpu.memory_space<vmem>>, vector<16x32xf32>
    tpu.vector_store %arg9[%c0_13, %c0_14], %12 {strides = array<i32>} : memref<16x32xf32, #tpu.memory_space<vmem>>, vector<16x32xf32>,
    %c0_i32_15 = arith.constant 0 : i32
    %14 = arith.cmpi eq, %arg2, %c0_i32_15 : i32
    %15 = arith.extui %14 : i1 to i32
    %c0_i32_16 = arith.constant 0 : i32
    %16 = arith.cmpi ne, %15, %c0_i32_16 : i32
    scf.if %16 {
      %c0_17 = arith.constant 0 : index
      %c0_18 = arith.constant 0 : index
      %17 = vector.load %arg6[%c0_17, %c0_18] : memref<2x32xf32, #tpu.memory_space<vmem>>, vector<2x32xf32>
      %c0_19 = arith.constant 0 : index
      %c0_20 = arith.constant 0 : index
      %18 = vector.load %arg8[%c0_19, %c0_20] : memref<16x32xf32, #tpu.memory_space<vmem>>, vector<16x32xf32>
      %19 = vector.extract_strided_slice %17 {offsets = [0, 0], sizes = [1, 32], strides = [1, 1]} : vector<2x32xf32> to vector<1x32xf32>
      %20 = vector.broadcast %19 : vector<1x32xf32> to vector<16x32xf32>
      %21 = arith.addf %18, %20 : vector<16x32xf32>
      %c0_21 = arith.constant 0 : index
      %c0_22 = arith.constant 0 : index
      %22 = vector.load %arg9[%c0_21, %c0_22] : memref<16x32xf32, #tpu.memory_space<vmem>>, vector<16x32xf32>
      %23 = vector.extract_strided_slice %17 {offsets = [1, 0], sizes = [1, 32], strides = [1, 1]} : vector<2x32xf32> to vector<1x32xf32>
      %24 = vector.broadcast %23 : vector<1x32xf32> to vector<16x32xf32>
      %25 = arith.addf %22, %24 : vector<16x32xf32>
      %cst_23 = arith.constant 5.000000e-01 : f32
      %26 = vector.broadcast %cst_23 : f32 to vector<16x32xf32>
      %27 = arith.mulf %26, %25 : vector<16x32xf32>
      %cst_24 = arith.constant 0.707106769 : f32
      %28 = vector.broadcast %cst_24 : f32 to vector<16x32xf32>
      %29 = arith.mulf %25, %28 : vector<16x32xf32>
      %30 = math.erf %29 : vector<16x32xf32>
      %cst_25 = arith.constant 1.000000e+00 : f32
      %31 = vector.broadcast %cst_25 : f32 to vector<16x32xf32>
      %32 = arith.addf %31, %30 : vector<16x32xf32>
      %33 = arith.mulf %27, %32 : vector<16x32xf32>
      %34 = arith.mulf %21, %33 : vector<16x32xf32>
      %c0_26 = arith.constant 0 : index
      %c0_27 = arith.constant 0 : index
      %35 = vector.load %arg7[%c0_26, %c0_27] : memref<16x32xf32, #tpu.memory_space<vmem>>, vector<16x32xf32>
      tpu.vector_store %arg7[%c0_26, %c0_27], %34 {strides = array<i32>} : memref<16x32xf32, #tpu.memory_space<vmem>>, vector<16x32xf32>,
    } else {
    }
    return
  }
  func.func @transform_0(%arg0: i32, %arg1: i32, %arg2: i32) -> (i32, i32) {
    %c0_i32 = arith.constant 0 : i32
    return %arg0, %arg2 : i32, i32
  }
  func.func @transform_1(%arg0: i32, %arg1: i32, %arg2: i32) -> (i32, i32) {
    %c0_i32 = arith.constant 0 : i32
    return %arg2, %arg1 : i32, i32
  }
  func.func @transform_2(%arg0: i32, %arg1: i32, %arg2: i32) -> (i32, i32) {
    %c0_i32 = arith.constant 0 : i32
    return %arg2, %arg1 : i32, i32
  }
  func.func @transform_3(%arg0: i32, %arg1: i32, %arg2: i32) -> (i32, i32) {
    %c0_i32 = arith.constant 0 : i32
    %c0_i32_0 = arith.constant 0 : i32
    return %c0_i32, %arg1 : i32, i32
  }
  func.func @transform_4(%arg0: i32, %arg1: i32, %arg2: i32) -> (i32, i32) {
    %c0_i32 = arith.constant 0 : i32
    return %arg0, %arg1 : i32, i32
  }
}

</mosaic_0001>

<bundles_post_ra>
// kernel: geglu_packed.1
= control target key start
LH: loop header
LB: loop body
LE: loop exit
PB: predicated region body
PF: predicated region fallthrough
CT: control target
= control target key end

     0   :  { %9 = vsyncpa [#allocation5], 0  ;;  %s574_s0 = inlined_call_operand.hbm [shape: f32[16,32], index: 0, kind: input, shape index: {}]   ;;  %s575_s1 = inlined_call_operand.hbm [shape: f32[32,32], index: 1, kind: input, shape index: {}]   ;;  %s576_s2 = inlined_call_operand.hbm [shape: f32[32,32], index: 2, kind: input, shape index: {}]   ;;  %s577_s3 = inlined_call_operand.vmem [shape: f32[2,32], index: 3, kind: input, shape index: {}]   ;;  %s578_s4 = inlined_call_operand.hbm [shape: f32[16,32], index: 4, kind: output, shape index: {}]  }
   0x1   :  { %10 = vsyncpa [#allocation8], 0 }
   0x2   :  { %11 = vsyncpa [#allocation6], 0  ;;  %s458_s15 = smov [#allocation7]   ;;  %s459_s17 = smov [#allocation4]  }
   0x3   :  { %s29_s16 = sshll.u32 %s458_s15, 4  ;;  %s17_s18 = sshll.u32 %s459_s17, 4  ;;  %s30_s16 = int_to_ptr.vmem [resolvable:$true] %s29_s16  ;;  %s490_s18 = int_to_ptr.vmem [resolvable:$true] %s17_s18 }
   0x4   :  { %s364_s21 = scalar_lea.hbm %s575_s1, 512 }
   0x5   :  { %p365_p0 = scmp.ne.s32.totalorder %s575_s1, %s364_s21  ;;  %p368_p1 = scmp.lt.u32.totalorder %s364_s21, %s575_s1 }
   0x7   :  { %p370_p2 = pnand %p368_p1, %p365_p0 }
   0x9   :  { %373 = shalt.err (!%p370_p2)
}
   0xa   :  { %s374_s26 = scalar_lea.vmem %s30_s16, 512  ;;  %p379_p4 = scmp.lt.s32.totalorder %s30_s16, %s30_s16 }
   0xb   :  { %p375_p3 = scmp.ne.s32.totalorder %s30_s16, %s374_s26  ;;  %p380_p5 = scmp.lt.s32.totalorder %s374_s26, %s374_s26 }
   0xd   :  { %p381_p6 = por %p380_p5, %p379_p4 }
   0xf   :  { %p382_p7 = pnand %p381_p6, %p375_p3 }
  0x11   :  { %385 = shalt.err (!%p382_p7)
}
  0x12   :  { %s460_s27 = smov 128   ;;  %s461_s28 = smov 8  }
  0x13   :  { %35 = dma.hbm_to_vmem [thread:$0]  %s575_s1, 512, %s30_s16, [#allocation8], %s460_s27, %s460_s27, %s461_s28  }
  0x14   :  { %s386_s7 = scalar_lea.hbm %s574_s0, 256 }
  0x15   :  { %p387_p8 = scmp.ne.s32.totalorder %s574_s0, %s386_s7  ;;  %p390_p9 = scmp.lt.u32.totalorder %s386_s7, %s574_s0 }
  0x17   :  { %p392_p10 = pnand %p390_p9, %p387_p8 }
  0x19   :  { %395 = shalt.err (!%p392_p10)
}
  0x1a   :  { %s396_s12 = scalar_lea.vmem %s490_s18, 256  ;;  %p401_p12 = scmp.lt.s32.totalorder %s490_s18, %s490_s18 }
  0x1b   :  { %p397_p11 = scmp.ne.s32.totalorder %s490_s18, %s396_s12  ;;  %p402_p13 = scmp.lt.s32.totalorder %s396_s12, %s396_s12 }
  0x1d   :  { %p403_p0 = por %p402_p13, %p401_p12 }
  0x1f   :  { %p404_p1 = pnand %p403_p0, %p397_p11 }
  0x21   :  { %407 = shalt.err (!%p404_p1)
}
  0x22   :  { %23 = dma.hbm_to_vmem [thread:$0]  %s574_s0, 256, %s490_s18, [#allocation5], %s460_s27, %s460_s27, %s461_s28  }
  0x23   :  { %s462_s14 = smov [#allocation9]   ;;  %s408_s19 = scalar_lea.hbm %s576_s2, 512 }
  0x24   :  { %s41_s15 = sshll.u32 %s462_s14, 4  ;;  %p409_p2 = scmp.ne.s32.totalorder %s576_s2, %s408_s19  ;;  %s42_s15 = int_to_ptr.vmem [resolvable:$true] %s41_s15 }
  0x25   :  { %p412_p3 = scmp.lt.u32.totalorder %s408_s19, %s576_s2 }
  0x27   :  { %p414_p4 = pnand %p412_p3, %p409_p2 }
  0x29   :  { %417 = shalt.err (!%p414_p4)
}
  0x2a   :  { %s418_s24 = scalar_lea.vmem %s42_s15, 512  ;;  %p423_p6 = scmp.lt.s32.totalorder %s42_s15, %s42_s15 }
  0x2b   :  { %p419_p5 = scmp.ne.s32.totalorder %s42_s15, %s418_s24  ;;  %p424_p7 = scmp.lt.s32.totalorder %s418_s24, %s418_s24 }
  0x2d   :  { %p425_p8 = por %p424_p7, %p423_p6 }
  0x2f   :  { %p426_p9 = pnand %p425_p8, %p419_p5 }
  0x31   :  { %429 = shalt.err (!%p426_p9)
}
  0x32   :  { %47 = dma.hbm_to_vmem [thread:$0]  %s576_s2, 512, %s42_s15, [#allocation8], %s460_s27, %s460_s27, %s461_s28  }
  0x33   :  { %452 = dma.done.wait [#allocation5], 256  }
  0x34   :  { %453 = vsyncadd [#allocation5], 4294967040 }
  0x35   :  { %454 = dma.done.wait [#allocation8], 1024  }
  0x36   :  { %455 = vsyncadd [#allocation8], 4294966272  ;;  %vm63_vm0 = vcmask 261120   ;;  %v463_v0 = vmov 0.0   ;;  %v164_v1 = vld [vmem:[#allocation9] sm:$0xff]  ;;  %v165_v2 = vld [vmem:[#allocation9 + $0x8] sm:$0xff]  ;;  %v253_v15 = vlaneseq }
  0x37   :  { %67 = vst.msk [vmem:[#allocation3 + $0x8] sm:$0xff] %vm63_vm0, %v463_v0  ;;  %64 = vst.msk [vmem:[#allocation2] sm:$0xff] %vm63_vm0, %v463_v0  ;;  %v166_v3 = vld [vmem:[#allocation9 + $0x10] sm:$0xff]  ;;  %v345_v4 = vpack.c.bf16 %v165_v2, %v164_v1  ;;  %v167_v5 = vld [vmem:[#allocation9 + $0x18] sm:$0xff] }
  0x38   :  { %65 = vst.msk [vmem:[#allocation2 + $0x8] sm:$0xff] %vm63_vm0, %v463_v0  ;;  %66 = vst.msk [vmem:[#allocation3] sm:$0xff] %vm63_vm0, %v463_v0  ;;  %v68_v6 = vld [vmem:[#allocation4] sm:$0xff]  ;;  %v349_v7 = vpack.c.bf16 %v167_v5, %v166_v3  ;;  %v72_v8 = vld [vmem:[#allocation7] sm:$0xff]  ;;  %v254_v18 = vshrl.u32 %v253_v15, 7 }
  0x39   :  { %334 = vmatprep.mubr.msk.f32.mxu1 %vm63_vm0, %v68_v6  ;;  %v73_v9 = vld [vmem:[#allocation7 + $0x8] sm:$0xff]  ;;  %v74_v10 = vld [vmem:[#allocation7 + $0x10] sm:$0xff]  ;;  %323 = vmatprep.mubr.msk.f32.mxu0 %vm63_vm0, %v68_v6  ;;  %v75_v12 = vld [vmem:[#allocation7 + $0x18] sm:$0xff] }
  0x3a   :  { %346 = vmatprep.subr.bf16.mxu1 %v345_v4  ;;  %v337_v11 = vpack.c.bf16 %v73_v9, %v72_v8  ;;  %v341_v13 = vpack.c.bf16 %v75_v12, %v74_v10  ;;  %v69_v14 = vld [vmem:[#allocation4 + $0x8] sm:$0xff]  ;;  %v263_v28 = vsub.s32 1, %v254_v18  ;;  %v250_v30 = vld [vmem:[%s577_s3] sm:$0x3]  ;;  %v255_v38 = vsub.s32 0, %v254_v18  ;;  %s464_s3 = smov [#allocation10]  }
  0x3b   :  { %348 = vmatpush3.bf16.msra.mxu1 %v345_v4  ;;  %s286_s26 = sshll.u32 %s464_s3, 4  ;;  %s287_s26 = int_to_ptr.vmem [resolvable:$true] %s286_s26 }
  0x3c   :  { %350 = vmatprep.subr.bf16.mxu1 %v349_v7  ;;  %338 = vmatprep.subr.bf16.mxu0 %v337_v11  ;;  %v264_v31 = vrot.slane %v250_v30, %v263_v28  ;;  %v256_v39 = vrot.slane %v250_v30, %v255_v38  ;;  %s430_s29 = scalar_lea.vmem %s287_s26, 256  ;;  %p435_p11 = scmp.lt.s32.totalorder %s287_s26, %s287_s26 }
  0x3d   :  { %340 = vmatpush3.bf16.msra.mxu0 %v337_v11  ;;  %p431_p10 = scmp.ne.s32.totalorder %s287_s26, %s430_s29  ;;  %p436_p12 = scmp.lt.s32.totalorder %s430_s29, %s430_s29 }
  0x3e   :  { %342 = vmatprep.subr.bf16.mxu0 %v341_v13  ;;  %v163_v16 = vld [vmem:[#allocation3 + $0x8] sm:$0xff]  ;;  %v70_v23 = vld [vmem:[#allocation2] sm:$0xff] }
  0x3f   :  { %352 = vmatpush3.bf16.msra.mxu1 %v349_v7  ;;  %v162_v17 = vld [vmem:[#allocation3] sm:$0xff]  ;;  %v71_v20 = vld [vmem:[#allocation2 + $0x8] sm:$0xff]  ;;  %p437_p13 = por %p436_p12, %p435_p11 }
  0x41   :  { %344 = vmatpush3.bf16.msra.mxu0 %v341_v13  ;;  %p438_p0 = pnand %p437_p13, %p431_p10 }
  0x42   :  { %335 = vmatmul.mubr.msk.f32.vlgmr.msra.gmra.mrb[0].mxu1 %vm63_vm0, %v69_v14 }
  0x44   :  { %324 = vmatmul.mubr.msk.f32.vlgmr.msra.gmra.mrb[0].mxu0 %vm63_vm0, %v69_v14 }
 0x115   :  { %v336_v19 = vpop.f32.mrb[0].mxu1 }
 0x116   :  { %v244_v21 = vadd.f32 %v336_v19, %v163_v16  ;;  %v234_v22 = vpop.f32.mrb[1].mxu1 }
 0x117   :  { %v243_v24 = vadd.f32 %v234_v22, %v162_v17  ;;  %v325_v25 = vpop.f32.mrb[0].mxu0 }
 0x118   :  { %246 = vst.msk [vmem:[#allocation3 + $0x8] sm:$0xff] %vm63_vm0, %v244_v21  ;;  %v159_v26 = vadd.f32 %v325_v25, %v71_v20  ;;  %v149_v27 = vpop.f32.mrb[1].mxu0 }
 0x119   :  { %245 = vst.msk [vmem:[#allocation3] sm:$0xff] %vm63_vm0, %v243_v24  ;;  %v158_v29 = vadd.f32 %v149_v27, %v70_v23 }
 0x11a   :  { %161 = vst.msk [vmem:[#allocation2 + $0x8] sm:$0xff] %vm63_vm0, %v159_v26 }
 0x11b   :  { %160 = vst.msk [vmem:[#allocation2] sm:$0xff] %vm63_vm0, %v158_v29 }
 0x11f   :  { %v260_v32 = vld [vmem:[#allocation3 + $0x8] sm:$0xff] }
 0x120   :  { %v259_v33 = vld [vmem:[#allocation3] sm:$0xff]  ;;  %v266_v34 = vadd.f32 %v264_v31, %v260_v32 }
 0x121   :  { %v265_v35 = vadd.f32 %v264_v31, %v259_v33  ;;  %v252_v40 = vld [vmem:[#allocation2 + $0x8] sm:$0xff] }
 0x122   :  { %v270_v36 = vmul.f32 0.70710677, %v266_v34  ;;  %v251_v41 = vld [vmem:[#allocation2] sm:$0xff]  ;;  %v258_v44 = vadd.f32 %v256_v39, %v252_v40  ;;  %v268_v45 = vmul.f32 0.5, %v266_v34 }
 0x123   :  { %v269_v37 = vmul.f32 0.70710677, %v265_v35  ;;  %v257_v47 = vadd.f32 %v256_v39, %v251_v41  ;;  %v267_v48 = vmul.f32 0.5, %v265_v35 }
 0x124   :  { %360 = verf.f32 %v270_v36 }
 0x125   :  { %362 = verf.f32 %v269_v37 }
 0x12e   :  { %v361_v42 = vpop.eup %360 }
 0x12f   :  { %v363_v43 = vpop.eup %362  ;;  %v274_v46 = vadd.f32 1.0, %v361_v42 }
 0x130   :  { %v273_v49 = vadd.f32 1.0, %v363_v43 }
 0x131   :  { %v276_v50 = vmul.f32 %v274_v46, %v268_v45 }
 0x132   :  { %v275_v51 = vmul.f32 %v273_v49, %v267_v48 }
 0x133   :  { %v278_v52 = vmul.f32 %v276_v50, %v258_v44 }
 0x134   :  { %v277_v53 = vmul.f32 %v275_v51, %v257_v47 }
 0x135   :  { %280 = vst.msk [vmem:[#allocation10 + $0x8] sm:$0xff] %vm63_vm0, %v278_v52 }
 0x136   :  { %279 = vst.msk [vmem:[#allocation10] sm:$0xff] %vm63_vm0, %v277_v53 }
 0x137   :  { %441 = shalt.err (!%p438_p0)
}
 0x138   :  { %s442_s6 = scalar_lea.hbm %s578_s4, 256 }
 0x139   :  { %p443_p1 = scmp.ne.s32.totalorder %s578_s4, %s442_s6  ;;  %p446_p2 = scmp.lt.u32.totalorder %s442_s6, %s578_s4 }
 0x13b   :  { %p448_p3 = pnand %p446_p2, %p443_p1 }
 0x13d   :  { %451 = shalt.err (!%p448_p3)
}
 0x13e   :  { %292 = dma.vmem_to_hbm [thread:$0]  %s287_s26, 256, %s578_s4, [#allocation6], %s460_s27, %s460_s27, %s461_s28  }
 0x13f   :  { %456 = dma.done.wait [#allocation6], 256  }
 0x140   :  { %457 = vsyncadd [#allocation6], 4294967040 }
 0x141   :  { %296 = vsyncpa [#allocation5], 1 }
 0x142   :  { %297 = vsyncpa [#allocation8], 1 }
 0x143   :  { %298 = vsyncpa [#allocation6], 1 }

</bundles_post_ra>
